<compile_context>
chip_gen: v7x
topology: tpu7x:2x2x1
jax: 0.10.0
libtpu: 0.0.40
codegen_flags: <defaults>
</compile_context>

<pallas_src>
import math
import jax
import jax.numpy as jnp
from jax.experimental import pallas as pl
from jax.experimental.pallas import tpu as pltpu


# ----------------------------- helpers ------------------------------------- #

def _pick_tile(full, target, align):
    """Largest tile <= target that is a multiple of `align` and divides `full`;
    falls back to the whole dimension (always legal as a full-extent block)."""
    if full <= target:
        return full
    t = (target // align) * align
    while t >= align:
        if full % t == 0:
            return t
        t -= align
    return full


def _vmem_limit_bytes():
    # ~85% of physical per-core VMEM (leave headroom for compiler-internal
    # scratch and the double buffers it inserts): ~54 MiB on v7x (64 MiB),
    # ~109 MiB on v5e/v6e (128 MiB).
    try:
        cap = pltpu.get_tpu_info().vmem_capacity_bytes
        return int(cap * 0.85)
    except Exception:
        return 64 * 1024 * 1024


def _layernorm(v, g, b, eps=1e-5):
    mu = jnp.mean(v, axis=-1, keepdims=True)
    var = jnp.mean((v - mu) ** 2, axis=-1, keepdims=True)
    return (v - mu) * jax.lax.rsqrt(var + eps) * g + b


def _erf_approx(z):
    # Abramowitz & Stegun 7.1.26, |error| < 1.5e-7.  Only exp + polynomial, so
    # it lowers on the VPU/EUP without relying on an erf primitive in Mosaic.
    a1, a2, a3, a4, a5 = (0.254829592, -0.284496736, 1.421413741,
                          -1.453152027, 1.061405429)
    p = 0.3275911
    s = jnp.where(z >= 0.0, 1.0, -1.0)
    x = jnp.abs(z)
    t = 1.0 / (1.0 + p * x)
    poly = ((((a5 * t + a4) * t + a3) * t + a2) * t + a1) * t
    return s * (1.0 - poly * jnp.exp(-x * x))


def _gelu_exact(u):
    # PyTorch nn.GELU() default = exact erf formulation (here to ~1.5e-7).
    return 0.5 * u * (1.0 + _erf_approx(u * 0.7071067811865476))


# ----------------------------- kernels ------------------------------------- #

def mixer_block_kernel(x_ref, xn_ref, conv_w_ref, conv_b_ref,
                       g_pat_ref, b_pat_ref, w1_ref, b1_ref, w2_ref, b2_ref,
                       o_ref, xn2_sc):
    # grid = (batch, row-tile, ffn-K-tile).  xn_ref holds the full seq-LN'd
    # (T, D) bf16 slab (RHS of the causal token mix, fetched once per batch
    # element); x_ref holds the fp32 residual rows for this row tile.  The FFN
    # inner dimension is K-tiled over the last ("arbitrary") grid axis; o_ref
    # stays VMEM-resident across it and acts as the fp32 accumulator.
    f = pl.program_id(2)

    @pl.when(f == 0)
    def _():
        # Causal token mix (conv_w already tril-masked + bf16 in the wrapper).
        h = jnp.dot(conv_w_ref[...], xn_ref[0],
                    preferred_element_type=jnp.float32)          # (tm, D) f32
        x1 = h + conv_b_ref[...] + x_ref[0]                      # residual 1
        xn2 = _layernorm(x1, g_pat_ref[...], b_pat_ref[...])     # patch LN
        xn2_sc[...] = xn2.astype(jnp.bfloat16)                   # reused over f
        o_ref[0] = x1 + b2_ref[...]        # residual 2 + final FFN bias

    # FFN K-tile: gelu is elementwise on the inner activation, so per-chunk
    # gelu + accumulate over Dff chunks is exact.
    u = jnp.dot(xn2_sc[...], w1_ref[...],
                preferred_element_type=jnp.float32) + b1_ref[...]
    u = _gelu_exact(u)
    o_ref[0] += jnp.dot(u.astype(jnp.bfloat16), w2_ref[...],
                        preferred_element_type=jnp.float32)


def head_loss_kernel(x_ref, w_ref, lab_ref, logits_ref, nll_ref,
                     m_sc, l_sc, t_sc):
    # grid = (batch, row-tile, vocab-tile).  x comes in pre-transposed (D, tm)
    # bf16, the head weight in its native (V, D) layout, so the matmul emits a
    # (tv, tm) tile directly in the module's final (B, V, T) logits layout.
    # Per-position online log-sum-exp + target-logit accumulators run over the
    # vocab axis; the NLL row is written at the last vocab tile.
    v_i = pl.program_id(2)
    nv = pl.num_programs(2)

    @pl.when(v_i == 0)
    def _():
        m_sc[...] = jnp.full_like(m_sc, -jnp.inf)
        l_sc[...] = jnp.zeros_like(l_sc)
        t_sc[...] = jnp.zeros_like(t_sc)

    tile = jnp.dot(w_ref[...], x_ref[0],
                   preferred_element_type=jnp.float32)           # (tv, tm) f32
    logits_ref[0] = tile

    tv, tm = tile.shape
    lab = lab_ref[0]                                             # (1, tm) int32
    row = jax.lax.broadcasted_iota(jnp.int32, (tv, tm), 0) + v_i * tv
    t_sc[...] += jnp.sum(jnp.where(row == lab, tile, 0.0),
                         axis=0, keepdims=True)

    m_new = jnp.maximum(m_sc[...], jnp.max(tile, axis=0, keepdims=True))
    l_sc[...] = (l_sc[...] * jnp.exp(m_sc[...] - m_new)
                 + jnp.sum(jnp.exp(tile - m_new), axis=0, keepdims=True))
    m_sc[...] = m_new

    @pl.when(v_i == nv - 1)
    def _():
        nll_ref[0] = m_sc[...] + jnp.log(l_sc[...]) - t_sc[...]


# ----------------------------- wrappers ------------------------------------ #

def run_mixer_block(x, params):
    B, T, D = x.shape
    Dff = params["w1"].shape[1]
    tm = _pick_tile(T, 256, 128)
    tf = _pick_tile(Dff, 1024, 128)

    # Pre-mask (causal) + bf16-cast the matmul weights once in the wrapper.
    conv_w = jnp.tril(params["conv_w"]).astype(jnp.bfloat16)
    w1 = params["w1"].astype(jnp.bfloat16)
    w2 = params["w2"].astype(jnp.bfloat16)

    # Sequence LayerNorm hoisted out of the kernel (was recomputed per row
    # tile); cast to bf16 once -> feeds the token-mix MXU directly and halves
    # its DMA into the kernel.
    xn = _layernorm(x, params["g_seq"], params["b_seq"]).astype(jnp.bfloat16)

    return pl.pallas_call(
        mixer_block_kernel,
        out_shape=jax.ShapeDtypeStruct((B, T, D), jnp.float32),
        grid=(B, T // tm, Dff // tf),
        in_specs=[
            pl.BlockSpec((1, tm, D), lambda b, r, f: (b, r, 0)),   # residual rows
            pl.BlockSpec((1, T, D), lambda b, r, f: (b, 0, 0)),    # seq-LN(x) bf16
            pl.BlockSpec((tm, T), lambda b, r, f: (r, 0)),         # conv weight rows
            pl.BlockSpec((tm, 1), lambda b, r, f: (r, 0)),         # conv bias rows
            pl.BlockSpec((1, D), lambda b, r, f: (0, 0)),          # patch LN gamma
            pl.BlockSpec((1, D), lambda b, r, f: (0, 0)),          # patch LN beta
            pl.BlockSpec((D, tf), lambda b, r, f: (0, f)),         # ff W1 K-slice
            pl.BlockSpec((1, tf), lambda b, r, f: (0, f)),         # ff b1 K-slice
            pl.BlockSpec((tf, D), lambda b, r, f: (f, 0)),         # ff W2 K-slice
            pl.BlockSpec((1, D), lambda b, r, f: (0, 0)),          # ff b2
        ],
        out_specs=pl.BlockSpec((1, tm, D), lambda b, r, f: (b, r, 0)),
        scratch_shapes=[pltpu.VMEM((tm, D), jnp.bfloat16)],        # patch-LN(x1)
        compiler_params=pltpu.CompilerParams(
            dimension_semantics=("parallel", "parallel", "arbitrary"),
            vmem_limit_bytes=_vmem_limit_bytes()),
    )(x, xn, conv_w, params["conv_b"], params["g_pat"], params["b_pat"],
      w1, params["b1"], w2, params["b2"])


def run_head_and_loss(x, w_head, shift_labels):
    """Fused lm_head + shifted-CE.  Returns (logits (B,V,T) f32, nll (B,1,T))."""
    B, T, D = x.shape
    V = w_head.shape[0]
    tm = _pick_tile(T, 512, 128)
    tv = _pick_tile(V, 512, 128)

    # Transpose + cast the activations once (cheap: B*T*D) so the kernel emits
    # logits directly in the module's (B, V, T) layout and streams bf16 x.
    x_t = jnp.swapaxes(x, 1, 2).astype(jnp.bfloat16)   # (B, D, T)
    w_bf16 = w_head.astype(jnp.bfloat16)               # (V, D)

    logits, nll = pl.pallas_call(
        head_loss_kernel,
        out_shape=(jax.ShapeDtypeStruct((B, V, T), jnp.float32),
                   jax.ShapeDtypeStruct((B, 1, T), jnp.float32)),
        grid=(B, T // tm, V // tv),
        in_specs=[
            pl.BlockSpec((1, D, tm), lambda b, t, v: (b, 0, t)),   # x^T bf16
            pl.BlockSpec((tv, D), lambda b, t, v: (v, 0)),         # head W bf16
            pl.BlockSpec((1, 1, tm), lambda b, t, v: (b, 0, t)),   # shift labels
        ],
        out_specs=(
            pl.BlockSpec((1, tv, tm), lambda b, t, v: (b, v, t)),  # logits (V,T)
            pl.BlockSpec((1, 1, tm), lambda b, t, v: (b, 0, t)),   # per-pos NLL
        ),
        scratch_shapes=[pltpu.VMEM((1, tm), jnp.float32),          # running max
                        pltpu.VMEM((1, tm), jnp.float32),          # running sumexp
                        pltpu.VMEM((1, tm), jnp.float32)],         # target logit
        compiler_params=pltpu.CompilerParams(
            dimension_semantics=("parallel", "parallel", "arbitrary"),
            vmem_limit_bytes=_vmem_limit_bytes()),
    )(x_t, w_bf16, shift_labels)
    return logits, nll


def language_mixer_forward(input_ids, labels, wte, blocks, w_head):
    B, T = input_ids.shape
    # Embedding gather (glue, plain JAX).
    x = jnp.take(wte, input_ids, axis=0).astype(jnp.float32)   # (B, T, D)
    for params in blocks:
        x = run_mixer_block(x, params)

    # shift_labels[b, t] = labels[b, t+1] for t < T-1 (last position padded;
    # its NLL is dropped from the mean below).
    labels_flat = labels.reshape(B, -1).astype(jnp.int32)       # 'b p t -> b (p t)'
    shift_labels = jnp.concatenate(
        [labels_flat[:, 1:], jnp.zeros((B, 1), jnp.int32)], axis=1)[:, None, :]

    logits, nll = run_head_and_loss(x, w_head, shift_labels)    # fused head + CE
    loss = jnp.mean(nll[:, 0, : T - 1])                         # mean over B*(T-1)
    return loss, logits                                         # logits already 'b e t'


# --------------------------- parameter init --------------------------------- #

def init_params(key, n_vocab, dim, depth, length):
    ff_dim = 4 * dim
    keys = jax.random.split(key, 2 + depth * 6)
    wte = jax.random.normal(keys[0], (n_vocab, dim), jnp.float32)
    # lm_head Linear(dim, n_vocab, bias=False): weight stays in (V, D) layout.
    w_head = jax.random.normal(keys[1], (n_vocab, dim), jnp.float32) / math.sqrt(dim)
    blocks = []
    for i in range(depth):
        k = keys[2 + 6 * i: 2 + 6 * (i + 1)]
        blocks.append(dict(
            g_seq=jnp.ones((1, dim), jnp.float32),
            b_seq=jnp.zeros((1, dim), jnp.float32),
            g_pat=jnp.ones((1, dim), jnp.float32),
            b_pat=jnp.zeros((1, dim), jnp.float32),
            # Conv1d(length, length, 1): weight (T, T, 1) -> (T, T), bias (T,) -> (T, 1)
            conv_w=jax.random.normal(k[0], (length, length), jnp.float32) / math.sqrt(length),
            conv_b=jax.random.normal(k[1], (length, 1), jnp.float32) * 0.02,
            # Linear(dim, 4*dim) and Linear(4*dim, dim), pre-transposed to (in, out)
            w1=jax.random.normal(k[2], (dim, ff_dim), jnp.float32) / math.sqrt(dim),
            b1=jax.random.normal(k[3], (1, ff_dim), jnp.float32) * 0.02,
            w2=jax.random.normal(k[4], (ff_dim, dim), jnp.float32) / math.sqrt(ff_dim),
            b2=jax.random.normal(k[5], (1, dim), jnp.float32) * 0.02,
        ))
    return wte, blocks, w_head


# ------------------------------- main ---------------------------------------- #

if __name__ == "__main__":
    B, T, D, V, DEPTH = 2, 8, 32, 32, 2   # batch, tokenized_length, dim, n_vocab, depth

    key = jax.random.PRNGKey(0)
    k_ids, k_par = jax.random.split(key)
    input_ids = jax.random.randint(k_ids, (B, T), 0, V, dtype=jnp.int32)
    labels = input_ids.reshape(B, 1, T)   # 'b p t' with p=1 (standard LM labels)

    wte, blocks, w_head = init_params(k_par, V, D, DEPTH, T)

    loss, output = language_mixer_forward(input_ids, labels, wte, blocks, w_head)
    jax.block_until_ready((loss, output))

    assert output.shape == (B, V, T)
    assert jnp.isfinite(loss)
    assert bool(jnp.all(jnp.isfinite(output)))
    print("KERNEL_OK")
</pallas_src>

<mosaic_0001>
module attributes {stable_mosaic.version = 11 : i64} {
  func.func @mixer_block_kernel(%arg0: i32, %arg1: i32, %arg2: i32, %arg3: memref<1x8x32xf32, #tpu.memory_space<vmem>>, %arg4: memref<1x8x32xbf16, #tpu.memory_space<vmem>>, %arg5: memref<8x8xbf16, #tpu.memory_space<vmem>>, %arg6: memref<8x1xf32, #tpu.memory_space<vmem>>, %arg7: memref<1x32xf32, #tpu.memory_space<vmem>>, %arg8: memref<1x32xf32, #tpu.memory_space<vmem>>, %arg9: memref<32x128xbf16, #tpu.memory_space<vmem>>, %arg10: memref<1x128xf32, #tpu.memory_space<vmem>>, %arg11: memref<128x32xbf16, #tpu.memory_space<vmem>>, %arg12: memref<1x32xf32, #tpu.memory_space<vmem>>, %arg13: memref<1x8x32xf32, #tpu.memory_space<vmem>>, %arg14: memref<8x32xbf16, #tpu.memory_space<vmem>>) attributes {dimension_semantics = [#tpu.dimension_semantics<parallel>, #tpu.dimension_semantics<parallel>, #tpu.dimension_semantics<arbitrary>], iteration_bounds = array<i64: 2, 1, 1>, scalar_prefetch = 0 : i64, scratch_operands = 1 : i64, tpu.core_type = #tpu.core_type<tc>, window_params = [{transform_indices = @transform_0, window_bounds = array<i64: 1, 8, 32>}, {transform_indices = @transform_1, window_bounds = array<i64: 1, 8, 32>}, {transform_indices = @transform_2, window_bounds = array<i64: 8, 8>}, {transform_indices = @transform_3, window_bounds = array<i64: 8, 1>}, {pipeline_mode = #tpu.pipeline_mode<synchronous>, transform_indices = @transform_4, window_bounds = array<i64: 1, 32>}, {pipeline_mode = #tpu.pipeline_mode<synchronous>, transform_indices = @transform_5, window_bounds = array<i64: 1, 32>}, {transform_indices = @transform_6, window_bounds = array<i64: 32, 128>}, {transform_indices = @transform_7, window_bounds = array<i64: 1, 128>}, {transform_indices = @transform_8, window_bounds = array<i64: 128, 32>}, {pipeline_mode = #tpu.pipeline_mode<synchronous>, transform_indices = @transform_9, window_bounds = array<i64: 1, 32>}, {transform_indices = @transform_10, window_bounds = array<i64: 1, 8, 32>}]} {
    %c0_i32 = arith.constant 0 : i32
    %0 = arith.cmpi eq, %arg2, %c0_i32 : i32
    %1 = arith.extui %0 : i1 to i32
    %c0_i32_0 = arith.constant 0 : i32
    %2 = arith.cmpi ne, %1, %c0_i32_0 : i32
    scf.if %2 {
      %c0_31 = arith.constant 0 : index
      %c0_32 = arith.constant 0 : index
      %59 = vector.load %arg5[%c0_31, %c0_32] : memref<8x8xbf16, #tpu.memory_space<vmem>>, vector<8x8xbf16>
      %c0_33 = arith.constant 0 : index
      %c0_34 = arith.constant 0 : index
      %c0_35 = arith.constant 0 : index
      %60 = vector.load %arg4[%c0_33, %c0_34, %c0_35] : memref<1x8x32xbf16, #tpu.memory_space<vmem>>, vector<1x8x32xbf16>
      %61 = vector.shape_cast %60 : vector<1x8x32xbf16> to vector<8x32xbf16>
      %cst_36 = arith.constant dense<0.000000e+00> : vector<8x32xf32>
      %62 = tpu.matmul %59, %61, %cst_36 {dimension_numbers = #tpu.dot_dimension_numbers<[1], [0], [0], [1], [0, 0, 1, 1], [], []>} : vector<8x8xbf16>, vector<8x32xbf16>, vector<8x32xf32> -> vector<8x32xf32>
      %c0_37 = arith.constant 0 : index
      %c0_38 = arith.constant 0 : index
      %63 = vector.load %arg6[%c0_37, %c0_38] : memref<8x1xf32, #tpu.memory_space<vmem>>, vector<8x1xf32>
      %64 = vector.broadcast %63 : vector<8x1xf32> to vector<8x32xf32>
      %65 = arith.addf %62, %64 : vector<8x32xf32>
      %c0_39 = arith.constant 0 : index
      %c0_40 = arith.constant 0 : index
      %c0_41 = arith.constant 0 : index
      %66 = vector.load %arg3[%c0_39, %c0_40, %c0_41] : memref<1x8x32xf32, #tpu.memory_space<vmem>>, vector<1x8x32xf32>
      %67 = vector.shape_cast %66 : vector<1x8x32xf32> to vector<8x32xf32>
      %68 = arith.addf %65, %67 : vector<8x32xf32>
      %c0_42 = arith.constant 0 : index
      %c0_43 = arith.constant 0 : index
      %69 = vector.load %arg7[%c0_42, %c0_43] : memref<1x32xf32, #tpu.memory_space<vmem>>, vector<1x32xf32>
      %c0_44 = arith.constant 0 : index
      %c0_45 = arith.constant 0 : index
      %70 = vector.load %arg8[%c0_44, %c0_45] : memref<1x32xf32, #tpu.memory_space<vmem>>, vector<1x32xf32>
      %cst_46 = arith.constant dense<0.000000e+00> : vector<8xf32>
      %71 = vector.multi_reduction <add>, %68, %cst_46 [1] : vector<8x32xf32> to vector<8xf32>
      %72 = vector.shape_cast %71 : vector<8xf32> to vector<8x1xf32>
      %cst_47 = arith.constant 3.200000e+01 : f32
      %73 = vector.broadcast %cst_47 : f32 to vector<8x1xf32>
      %74 = arith.divf %72, %73 : vector<8x1xf32>
      %75 = vector.broadcast %74 : vector<8x1xf32> to vector<8x32xf32>
      %76 = arith.subf %68, %75 : vector<8x32xf32>
      %77 = arith.mulf %76, %76 : vector<8x32xf32>
      %cst_48 = arith.constant dense<0.000000e+00> : vector<8xf32>
      %78 = vector.multi_reduction <add>, %77, %cst_48 [1] : vector<8x32xf32> to vector<8xf32>
      %79 = vector.shape_cast %78 : vector<8xf32> to vector<8x1xf32>
      %cst_49 = arith.constant 3.200000e+01 : f32
      %80 = vector.broadcast %cst_49 : f32 to vector<8x1xf32>
      %81 = arith.divf %79, %80 : vector<8x1xf32>
      %82 = vector.broadcast %74 : vector<8x1xf32> to vector<8x32xf32>
      %83 = arith.subf %68, %82 : vector<8x32xf32>
      %cst_50 = arith.constant 9.99999974E-6 : f32
      %84 = vector.broadcast %cst_50 : f32 to vector<8x1xf32>
      %85 = arith.addf %81, %84 : vector<8x1xf32>
      %86 = math.rsqrt %85 : vector<8x1xf32>
      %87 = vector.broadcast %86 : vector<8x1xf32> to vector<8x32xf32>
      %88 = arith.mulf %83, %87 : vector<8x32xf32>
      %89 = vector.broadcast %69 : vector<1x32xf32> to vector<8x32xf32>
      %90 = arith.mulf %88, %89 : vector<8x32xf32>
      %91 = vector.broadcast %70 : vector<1x32xf32> to vector<8x32xf32>
      %92 = arith.addf %90, %91 : vector<8x32xf32>
      %93 = arith.truncf %92 : vector<8x32xf32> to vector<8x32xbf16>
      %c0_51 = arith.constant 0 : index
      %c0_52 = arith.constant 0 : index
      %94 = vector.load %arg14[%c0_51, %c0_52] : memref<8x32xbf16, #tpu.memory_space<vmem>>, vector<8x32xbf16>
      tpu.vector_store %arg14[%c0_51, %c0_52], %93 {strides = array<i32>} : memref<8x32xbf16, #tpu.memory_space<vmem>>, vector<8x32xbf16>,
      %c0_53 = arith.constant 0 : index
      %c0_54 = arith.constant 0 : index
      %95 = vector.load %arg12[%c0_53, %c0_54] : memref<1x32xf32, #tpu.memory_space<vmem>>, vector<1x32xf32>
      %96 = vector.broadcast %95 : vector<1x32xf32> to vector<8x32xf32>
      %97 = arith.addf %68, %96 : vector<8x32xf32>
      %c0_55 = arith.constant 0 : index
      %c0_56 = arith.constant 0 : index
      %c0_57 = arith.constant 0 : index
      %98 = vector.load %arg13[%c0_55, %c0_56, %c0_57] : memref<1x8x32xf32, #tpu.memory_space<vmem>>, vector<1x8x32xf32>
      %99 = vector.shape_cast %98 : vector<1x8x32xf32> to vector<8x32xf32>
      %100 = vector.shape_cast %97 : vector<8x32xf32> to vector<1x8x32xf32>
      tpu.vector_store %arg13[%c0_55, %c0_56, %c0_57], %100 {strides = array<i32>} : memref<1x8x32xf32, #tpu.memory_space<vmem>>, vector<1x8x32xf32>,
    } else {
    }
    %c0 = arith.constant 0 : index
    %c0_1 = arith.constant 0 : index
    %3 = vector.load %arg14[%c0, %c0_1] : memref<8x32xbf16, #tpu.memory_space<vmem>>, vector<8x32xbf16>
    %c0_2 = arith.constant 0 : index
    %c0_3 = arith.constant 0 : index
    %4 = vector.load %arg9[%c0_2, %c0_3] : memref<32x128xbf16, #tpu.memory_space<vmem>>, vector<32x128xbf16>
    %cst = arith.constant dense<0.000000e+00> : vector<8x128xf32>
    %5 = tpu.matmul %3, %4, %cst {dimension_numbers = #tpu.dot_dimension_numbers<[1], [0], [0], [1], [0, 0, 1, 1], [], []>} : vector<8x32xbf16>, vector<32x128xbf16>, vector<8x128xf32> -> vector<8x128xf32>
    %c0_4 = arith.constant 0 : index
    %c0_5 = arith.constant 0 : index
    %6 = vector.load %arg10[%c0_4, %c0_5] : memref<1x128xf32, #tpu.memory_space<vmem>>, vector<1x128xf32>
    %7 = vector.broadcast %6 : vector<1x128xf32> to vector<8x128xf32>
    %8 = arith.addf %5, %7 : vector<8x128xf32>
    %cst_6 = arith.constant 5.000000e-01 : f32
    %9 = vector.broadcast %cst_6 : f32 to vector<8x128xf32>
    %10 = arith.mulf %9, %8 : vector<8x128xf32>
    %cst_7 = arith.constant 0.707106769 : f32
    %11 = vector.broadcast %cst_7 : f32 to vector<8x128xf32>
    %12 = arith.mulf %8, %11 : vector<8x128xf32>
    %cst_8 = arith.constant 0.000000e+00 : f32
    %13 = vector.broadcast %cst_8 : f32 to vector<8x128xf32>
    %14 = arith.cmpf oge, %12, %13 : vector<8x128xf32>
    %cst_9 = arith.constant 1.000000e+00 : f32
    %cst_10 = arith.constant -1.000000e+00 : f32
    %15 = vector.broadcast %cst_9 : f32 to vector<8x128xf32>
    %16 = vector.broadcast %cst_10 : f32 to vector<8x128xf32>
    %17 = arith.select %14, %15, %16 : vector<8x128xi1>, vector<8x128xf32>
    %18 = math.absf %12 : vector<8x128xf32>
    %cst_11 = arith.constant 0.327591091 : f32
    %19 = vector.broadcast %cst_11 : f32 to vector<8x128xf32>
    %20 = arith.mulf %19, %18 : vector<8x128xf32>
    %cst_12 = arith.constant 1.000000e+00 : f32
    %21 = vector.broadcast %cst_12 : f32 to vector<8x128xf32>
    %22 = arith.addf %21, %20 : vector<8x128xf32>
    %cst_13 = arith.constant 1.000000e+00 : f32
    %23 = vector.broadcast %cst_13 : f32 to vector<8x128xf32>
    %24 = arith.divf %23, %22 : vector<8x128xf32>
    %cst_14 = arith.constant 1.06140542 : f32
    %25 = vector.broadcast %cst_14 : f32 to vector<8x128xf32>
    %26 = arith.mulf %25, %24 : vector<8x128xf32>
    %cst_15 = arith.constant -1.45315206 : f32
    %27 = vector.broadcast %cst_15 : f32 to vector<8x128xf32>
    %28 = arith.addf %26, %27 : vector<8x128xf32>
    %29 = arith.mulf %28, %24 : vector<8x128xf32>
    %cst_16 = arith.constant 1.42141378 : f32
    %30 = vector.broadcast %cst_16 : f32 to vector<8x128xf32>
    %31 = arith.addf %29, %30 : vector<8x128xf32>
    %32 = arith.mulf %31, %24 : vector<8x128xf32>
    %cst_17 = arith.constant -0.284496725 : f32
    %33 = vector.broadcast %cst_17 : f32 to vector<8x128xf32>
    %34 = arith.addf %32, %33 : vector<8x128xf32>
    %35 = arith.mulf %34, %24 : vector<8x128xf32>
    %cst_18 = arith.constant 0.254829586 : f32
    %36 = vector.broadcast %cst_18 : f32 to vector<8x128xf32>
    %37 = arith.addf %35, %36 : vector<8x128xf32>
    %38 = arith.mulf %37, %24 : vector<8x128xf32>
    %cst_19 = arith.constant 0.000000e+00 : f32
    %39 = vector.broadcast %cst_19 : f32 to vector<8x128xf32>
    %40 = arith.subf %39, %18 : vector<8x128xf32>
    %41 = arith.mulf %40, %18 : vector<8x128xf32>
    %42 = math.exp %41 : vector<8x128xf32>
    %43 = arith.mulf %38, %42 : vector<8x128xf32>
    %cst_20 = arith.constant 1.000000e+00 : f32
    %44 = vector.broadcast %cst_20 : f32 to vector<8x128xf32>
    %45 = arith.subf %44, %43 : vector<8x128xf32>
    %46 = arith.mulf %17, %45 : vector<8x128xf32>
    %cst_21 = arith.constant 1.000000e+00 : f32
    %47 = vector.broadcast %cst_21 : f32 to vector<8x128xf32>
    %48 = arith.addf %47, %46 : vector<8x128xf32>
    %49 = arith.mulf %10, %48 : vector<8x128xf32>
    %c0_22 = arith.constant 0 : index
    %c0_23 = arith.constant 0 : index
    %c0_24 = arith.constant 0 : index
    %50 = vector.load %arg13[%c0_22, %c0_23, %c0_24] : memref<1x8x32xf32, #tpu.memory_space<vmem>>, vector<1x8x32xf32>
    %51 = vector.shape_cast %50 : vector<1x8x32xf32> to vector<8x32xf32>
    %52 = arith.truncf %49 : vector<8x128xf32> to vector<8x128xbf16>
    %c0_25 = arith.constant 0 : index
    %c0_26 = arith.constant 0 : index
    %53 = vector.load %arg11[%c0_25, %c0_26] : memref<128x32xbf16, #tpu.memory_space<vmem>>, vector<128x32xbf16>
    %cst_27 = arith.constant dense<0.000000e+00> : vector<8x32xf32>
    %54 = tpu.matmul %52, %53, %cst_27 {dimension_numbers = #tpu.dot_dimension_numbers<[1], [0], [0], [1], [0, 0, 1, 1], [], []>} : vector<8x128xbf16>, vector<128x32xbf16>, vector<8x32xf32> -> vector<8x32xf32>
    %55 = arith.addf %51, %54 : vector<8x32xf32>
    %c0_28 = arith.constant 0 : index
    %c0_29 = arith.constant 0 : index
    %c0_30 = arith.constant 0 : index
    %56 = vector.load %arg13[%c0_28, %c0_29, %c0_30] : memref<1x8x32xf32, #tpu.memory_space<vmem>>, vector<1x8x32xf32>
    %57 = vector.shape_cast %56 : vector<1x8x32xf32> to vector<8x32xf32>
    %58 = vector.shape_cast %55 : vector<8x32xf32> to vector<1x8x32xf32>
    tpu.vector_store %arg13[%c0_28, %c0_29, %c0_30], %58 {strides = array<i32>} : memref<1x8x32xf32, #tpu.memory_space<vmem>>, vector<1x8x32xf32>,
    return
  }
  func.func @transform_0(%arg0: i32, %arg1: i32, %arg2: i32) -> (i32, i32, i32) {
    %c0_i32 = arith.constant 0 : i32
    %c0_i32_0 = arith.constant 0 : i32
    return %arg0, %arg1, %c0_i32 : i32, i32, i32
  }
  func.func @transform_1(%arg0: i32, %arg1: i32, %arg2: i32) -> (i32, i32, i32) {
    %c0_i32 = arith.constant 0 : i32
    %c0_i32_0 = arith.constant 0 : i32
    %c0_i32_1 = arith.constant 0 : i32
    return %arg0, %c0_i32, %c0_i32_0 : i32, i32, i32
  }
  func.func @transform_2(%arg0: i32, %arg1: i32, %arg2: i32) -> (i32, i32) {
    %c0_i32 = arith.constant 0 : i32
    %c0_i32_0 = arith.constant 0 : i32
    return %arg1, %c0_i32 : i32, i32
  }
  func.func @transform_3(%arg0: i32, %arg1: i32, %arg2: i32) -> (i32, i32) {
    %c0_i32 = arith.constant 0 : i32
    %c0_i32_0 = arith.constant 0 : i32
    return %arg1, %c0_i32 : i32, i32
  }
  func.func @transform_4(%arg0: i32, %arg1: i32, %arg2: i32) -> (i32, i32) {
    %c0_i32 = arith.constant 0 : i32
    %c0_i32_0 = arith.constant 0 : i32
    %c0_i32_1 = arith.constant 0 : i32
    return %c0_i32, %c0_i32_0 : i32, i32
  }
  func.func @transform_5(%arg0: i32, %arg1: i32, %arg2: i32) -> (i32, i32) {
    %c0_i32 = arith.constant 0 : i32
    %c0_i32_0 = arith.constant 0 : i32
    %c0_i32_1 = arith.constant 0 : i32
    return %c0_i32, %c0_i32_0 : i32, i32
  }
  func.func @transform_6(%arg0: i32, %arg1: i32, %arg2: i32) -> (i32, i32) {
    %c0_i32 = arith.constant 0 : i32
    %c0_i32_0 = arith.constant 0 : i32
    return %c0_i32, %arg2 : i32, i32
  }
  func.func @transform_7(%arg0: i32, %arg1: i32, %arg2: i32) -> (i32, i32) {
    %c0_i32 = arith.constant 0 : i32
    %c0_i32_0 = arith.constant 0 : i32
    return %c0_i32, %arg2 : i32, i32
  }
  func.func @transform_8(%arg0: i32, %arg1: i32, %arg2: i32) -> (i32, i32) {
    %c0_i32 = arith.constant 0 : i32
    %c0_i32_0 = arith.constant 0 : i32
    return %arg2, %c0_i32 : i32, i32
  }
  func.func @transform_9(%arg0: i32, %arg1: i32, %arg2: i32) -> (i32, i32) {
    %c0_i32 = arith.constant 0 : i32
    %c0_i32_0 = arith.constant 0 : i32
    %c0_i32_1 = arith.constant 0 : i32
    return %c0_i32, %c0_i32_0 : i32, i32
  }
  func.func @transform_10(%arg0: i32, %arg1: i32, %arg2: i32) -> (i32, i32, i32) {
    %c0_i32 = arith.constant 0 : i32
    %c0_i32_0 = arith.constant 0 : i32
    return %arg0, %arg1, %c0_i32 : i32, i32, i32
  }
}

</mosaic_0001>

<bundles_post_ra>
// kernel: tpu_custom_call.1
= control target key start
LH: loop header
LB: loop body
LE: loop exit
PB: predicated region body
PF: predicated region fallthrough
CT: control target
= control target key end

     0   :  { %s2279_s0 = inlined_call_operand.hbm [shape: f32[2,8,32], index: 0, kind: input, shape index: {}]   ;;  %s2280_s1 = inlined_call_operand.hbm [shape: bf16[2,8,32], index: 1, kind: input, shape index: {}]   ;;  %s2281_s2 = inlined_call_operand.hbm [shape: bf16[8,8], index: 2, kind: input, shape index: {}]   ;;  %s2282_s3 = inlined_call_operand.hbm [shape: f32[8,1], index: 3, kind: input, shape index: {}]   ;;  %s2283_s4 = inlined_call_operand.hbm [shape: f32[1,32], index: 4, kind: input, shape index: {}]   ;;  %s2284_s5 = inlined_call_operand.hbm [shape: f32[1,32], index: 5, kind: input, shape index: {}]   ;;  %s2285_s6 = inlined_call_operand.hbm [shape: bf16[32,128], index: 6, kind: input, shape index: {}]   ;;  %s2286_s7 = inlined_call_operand.hbm [shape: f32[1,128], index: 7, kind: input, shape index: {}]   ;;  %s2287_s8 = inlined_call_operand.hbm [shape: bf16[128,32], index: 8, kind: input, shape index: {}]   ;;  %s2288_s9 = inlined_call_operand.hbm [shape: f32[1,32], index: 9, kind: input, shape index: {}]   ;;  %s2289_s10 = inlined_call_operand.hbm [shape: f32[2,8,32], index: 10, kind: output, shape index: {}]  }
   0x1   :  { %2295 = sst [smem:[#allocation30_spill]] %s2279_s0 }
   0x2   :  { %2296 = sst [smem:[#allocation31_spill]] %s2281_s2 }
   0x3   :  { %2297 = sst [smem:[#allocation32_spill]] %s2282_s3 }
   0x4   :  { %2298 = sst [smem:[#allocation33_spill]] %s2283_s4 }
   0x5   :  { %2299 = sst [smem:[#allocation34_spill]] %s2284_s5 }
   0x6   :  { %2300 = sst [smem:[#allocation35_spill]] %s2285_s6 }
   0x7   :  { %2301 = sst [smem:[#allocation36_spill]] %s2289_s10 }
   0x8   :  { %15 = vsyncpa [#allocation4], 0 }
   0x9   :  { %17 = vsyncpa [#allocation4 + $0x1], 0 }
   0xa   :  { %18 = vsyncpa [#allocation7], 0 }
   0xb   :  { %20 = vsyncpa [#allocation7 + $0x1], 0 }
   0xc   :  { %21 = vsyncpa [#allocation10], 0 }
   0xd   :  { %22 = vsyncpa [#allocation13], 0 }
   0xe   :  { %23 = vsyncpa [#allocation16], 0 }
   0xf   :  { %24 = vsyncpa [#allocation19], 0 }
  0x10   :  { %25 = vsyncpa [#allocation5], 0 }
  0x11   :  { %27 = vsyncpa [#allocation5 + $0x1], 0  ;;  %s1824_s13 = smov 0   ;;  %s1826_s14 = smov 0  }
  0x12   :  { %s1828_s15 = smov 0   ;;  %s1830_s16 = smov 0  }
  0x13   :  { %s1832_s17 = smov 0   ;;  %s1834_s18 = smov 0  }
  0x14 LB: > { %2302 = sst [smem:[#allocation29_spill]] %s1742_s16  ;;  %s1855_s19 = sadd.s32 4294967295, %s1750_s18   ;;  %s1750_s18 = sphi %s1834_s18, %s33_s18   ;;  %s1746_s17 = sphi %s1832_s17, %s2340_s17   ;;  %s1742_s16 = sphi %s1830_s16, %s2339_s16   ;;  %s1738_s15 = sphi %s1828_s15, %s2338_s15   ;;  %s1734_s14 = sphi %s1826_s14, %s2337_s14   ;;  %s1730_s13 = sphi %s1824_s13, %s2336_s13  }
  0x15   : > { %p1095_p0 = scmp.ge.s32.totalorder %s1750_s18, 1  ;;  %p2290_p1 = scmp.eq.s32.totalorder %s1855_s19, 0 }
  0x16   : > { %p332_p2 = scmp.lt.s32.totalorder %s1750_s18, 3  ;;  %s1752_s21 = smov [#allocation8]  }
  0x17   : > { %s347_s22 = sshll.u32 %s1752_s21, 4  ;;  %s1753_s23 = smov [#allocation9]   ;;  %s348_s22 = int_to_ptr.vmem [resolvable:$true] %s347_s22 }
  0x18   : > { %p1860_p3 = pnand %p1095_p0, %p332_p2  ;;  %s360_s24 = sshll.u32 %s1753_s23, 4  ;;  %s1873_s24 = int_to_ptr.vmem [resolvable:$true] %s360_s24 }
  0x19   : > { %s1754_s26 = smov [#allocation12]   ;;  %s2305_s2 = sld [smem:[#allocation31_spill]] }
  0x1a   : > { %s2303_s20 = scalar_select %p1860_p3, 1, 0 }
  0x1b   : > { %p1227_p5 = pneg %p1860_p3  ;;  %s382_s27 = sshll.u32 %s1754_s26, 4  ;;  %s1875_s27 = int_to_ptr.vmem [resolvable:$true] %s382_s27 }
  0x1d   : > { %p1869_p6 = pnand %p1227_p5, %p2290_p1 }
  0x1f   : > { %s1360_s30 = scalar_lea.hbm %s2305_s2, 64  ;;  %p1885_p8 = pneg %p1869_p6 }
  0x20   : > { %p1361_p7 = scmp.ne.s32.totalorder %s2305_s2, %s1360_s30  ;;  %p1367_p11 = scmp.lt.u32.totalorder %s1360_s30, %s2305_s2 }
  0x22   : > { %p1363_p9 = pnand %p1885_p8, %p1361_p7 }
  0x24   : > { %p1364_p10 = pneg %p1363_p9 }
  0x26   : > { %p1369_p12 = pnand %p1367_p11, %p1364_p10 }
  0x28   : > { %1372 = shalt.err (!%p1369_p12)
}
  0x29   : > { %s1373_s28 = scalar_lea.vmem %s348_s22, 64  ;;  %p1381_p5 = scmp.lt.s32.totalorder %s348_s22, %s348_s22 }
  0x2a   : > { %p1374_p13 = scmp.ne.s32.totalorder %s348_s22, %s1373_s28  ;;  %p1382_p4 = scmp.lt.s32.totalorder %s1373_s28, %s1373_s28 }
  0x2c   : > { %p1376_p0 = pnand %p1374_p13, %p1885_p8  ;;  %p1383_p1 = por %p1382_p4, %p1381_p5 }
  0x2e   : > { %p1377_p2 = pneg %p1376_p0 }
  0x30   : > { %p1384_p3 = pnand %p1383_p1, %p1377_p2 }
  0x32   : > { %1387 = shalt.err (!%p1384_p3)
}
  0x33   : > { %1230 = dma.hbm_to_vmem [thread:$0]  (!%p1869_p6), %s2305_s2, 64, %s348_s22, [#allocation7]  }
  0x34   : > { %s2307_s3 = sld [smem:[#allocation32_spill]] }
  0x3a   : > { %s1388_s23 = scalar_lea.hbm %s2307_s3, 128 }
  0x3b   : > { %p1389_p7 = scmp.ne.s32.totalorder %s2307_s3, %s1388_s23  ;;  %p1395_p1 = scmp.lt.u32.totalorder %s1388_s23, %s2307_s3 }
  0x3d   : > { %p1391_p9 = pnand %p1389_p7, %p1885_p8 }
  0x3f   : > { %p1392_p4 = pneg %p1391_p9 }
  0x41   : > { %p1397_p3 = pnand %p1395_p1, %p1392_p4 }
  0x43   : > { %1400 = shalt.err (!%p1397_p3)
}
  0x44   : > { %s1401_s22 = scalar_lea.vmem %s1873_s24, 128  ;;  %p1409_p13 = scmp.lt.s32.totalorder %s1873_s24, %s1873_s24 }
  0x45   : > { %p1402_p10 = scmp.ne.s32.totalorder %s1873_s24, %s1401_s22  ;;  %p1410_p0 = scmp.lt.s32.totalorder %s1401_s22, %s1401_s22 }
  0x47   : > { %p1404_p11 = pnand %p1402_p10, %p1885_p8  ;;  %p1411_p2 = por %p1410_p0, %p1409_p13 }
  0x49   : > { %p1405_p12 = pneg %p1404_p11 }
  0x4b   : > { %p1412_p5 = pnand %p1411_p2, %p1405_p12 }
  0x4d   : > { %1415 = shalt.err (!%p1412_p5)
}
  0x4e   : > { %1233 = dma.hbm_to_vmem [thread:$0]  (!%p1869_p6), %s2307_s3, 128, %s1873_s24, [#allocation10]  }
  0x4f   : > { %s2308_s5 = sld [smem:[#allocation34_spill]] }
  0x55   : > { %s1416_s30 = scalar_lea.hbm %s2308_s5, 16 }
  0x56   : > { %p1417_p7 = scmp.ne.s32.totalorder %s2308_s5, %s1416_s30  ;;  %p1423_p1 = scmp.lt.u32.totalorder %s1416_s30, %s2308_s5 }
  0x58   : > { %p1419_p9 = pnand %p1417_p7, %p1885_p8 }
  0x5a   : > { %p1420_p4 = pneg %p1419_p9 }
  0x5c   : > { %p1425_p3 = pnand %p1423_p1, %p1420_p4 }
  0x5e   : > { %1428 = shalt.err (!%p1425_p3)
}
  0x5f   : > { %s1429_s24 = scalar_lea.vmem %s1875_s27, 16  ;;  %s1436_s22 = scalar_lea.vmem %s1875_s27, 32 }
  0x60   : > { %p1430_p10 = scmp.ne.s32.totalorder %s1875_s27, %s1429_s24  ;;  %p1437_p13 = scmp.lt.s32.totalorder %s1875_s27, %s1875_s27 }
  0x61   : > { %p1438_p0 = scmp.lt.s32.totalorder %s1436_s22, %s1429_s24 }
  0x62   : > { %p1432_p11 = pnand %p1430_p10, %p1885_p8 }
  0x63   : > { %p1439_p2 = por %p1438_p0, %p1437_p13 }
  0x64   : > { %p1433_p12 = pneg %p1432_p11 }
  0x66   : > { %p1440_p5 = pnand %p1439_p2, %p1433_p12 }
  0x68   : > { %1443 = shalt.err (!%p1440_p5)
}
  0x69   : > { %1239 = dma.hbm_to_vmem [thread:$0]  (!%p1869_p6), %s2308_s5, 16, %s1875_s27, [#allocation13]  }
  0x6a   : > { %s1755_s29 = smov [#allocation15]   ;;  %s1756_s30 = smov [#allocation11]  }
  0x6b   : > { %s410_s11 = sshll.u32 %s1755_s29, 4  ;;  %s371_s12 = sshll.u32 %s1756_s30, 4  ;;  %s411_s11 = int_to_ptr.vmem [resolvable:$true] %s410_s11  ;;  %s372_s12 = int_to_ptr.vmem [resolvable:$true] %s371_s12 }
  0x6c   : > { %s1444_s28 = scalar_lea.hbm %s2286_s7, 16 }
  0x6d   : > { %p1445_p7 = scmp.ne.s32.totalorder %s2286_s7, %s1444_s28  ;;  %p1451_p1 = scmp.lt.u32.totalorder %s1444_s28, %s2286_s7 }
  0x6f   : > { %p1447_p9 = pnand %p1445_p7, %p1885_p8 }
  0x71   : > { %p1448_p4 = pneg %p1447_p9 }
  0x73   : > { %p1453_p3 = pnand %p1451_p1, %p1448_p4 }
  0x75   : > { %1456 = shalt.err (!%p1453_p3)
}
  0x76   : > { %s1457_s27 = scalar_lea.vmem %s411_s11, 16  ;;  %s1464_s16 = scalar_lea.vmem %s411_s11, 32 }
  0x77   : > { %p1458_p10 = scmp.ne.s32.totalorder %s411_s11, %s1457_s27  ;;  %p1465_p13 = scmp.lt.s32.totalorder %s411_s11, %s411_s11 }
  0x78   : > { %p1466_p0 = scmp.lt.s32.totalorder %s1464_s16, %s1457_s27 }
  0x79   : > { %p1460_p11 = pnand %p1458_p10, %p1885_p8 }
  0x7a   : > { %p1467_p2 = por %p1466_p0, %p1465_p13 }
  0x7b   : > { %p1461_p12 = pneg %p1460_p11 }
  0x7d   : > { %p1468_p5 = pnand %p1467_p2, %p1461_p12 }
  0x7f   : > { %1471 = shalt.err (!%p1468_p5)
}
  0x80   : > { %1245 = dma.hbm_to_vmem [thread:$0]  (!%p1869_p6), %s2286_s7, 16, %s411_s11, [#allocation16]  }
  0x81   : > { %s2309_s4 = sld [smem:[#allocation33_spill]] }
  0x87   : > { %s1472_s26 = scalar_lea.hbm %s2309_s4, 16 }
  0x88   : > { %p1473_p7 = scmp.ne.s32.totalorder %s2309_s4, %s1472_s26  ;;  %p1479_p1 = scmp.lt.u32.totalorder %s1472_s26, %s2309_s4 }
  0x8a   : > { %p1475_p9 = pnand %p1473_p7, %p1885_p8 }
  0x8c   : > { %p1476_p4 = pneg %p1475_p9 }
  0x8e   : > { %p1481_p3 = pnand %p1479_p1, %p1476_p4 }
  0x90   : > { %1484 = shalt.err (!%p1481_p3)
}
  0x91   : > { %s1485_s27 = scalar_lea.vmem %s372_s12, 16  ;;  %s1492_s11 = scalar_lea.vmem %s372_s12, 32 }
  0x92   : > { %p1486_p10 = scmp.ne.s32.totalorder %s372_s12, %s1485_s27  ;;  %p1493_p13 = scmp.lt.s32.totalorder %s372_s12, %s372_s12 }
  0x93   : > { %p1494_p0 = scmp.lt.s32.totalorder %s1492_s11, %s1485_s27 }
  0x94   : > { %p1488_p11 = pnand %p1486_p10, %p1885_p8 }
  0x95   : > { %p1495_p2 = por %p1494_p0, %p1493_p13 }
  0x96   : > { %p1489_p12 = pneg %p1488_p11 }
  0x98   : > { %p1496_p5 = pnand %p1495_p2, %p1489_p12 }
  0x9a   : > { %1499 = shalt.err (!%p1496_p5)
}
  0x9b   : > { %1236 = dma.hbm_to_vmem [thread:$0]  (!%p1869_p6), %s2309_s4, 16, %s372_s12, [#allocation10]  }
  0x9c   : > { %s1757_s30 = smov [#allocation14]   ;;  %s2310_s6 = sld [smem:[#allocation35_spill]] }
  0x9d   : > { %s394_s2 = sshll.u32 %s1757_s30, 4  ;;  %s395_s2 = int_to_ptr.vmem [resolvable:$true] %s394_s2 }
  0xa2   : > { %s1500_s28 = scalar_lea.hbm %s2310_s6, 256 }
  0xa3   : > { %p1501_p7 = scmp.ne.s32.totalorder %s2310_s6, %s1500_s28  ;;  %p1507_p1 = scmp.lt.u32.totalorder %s1500_s28, %s2310_s6 }
  0xa5   : > { %p1503_p9 = pnand %p1501_p7, %p1885_p8 }
  0xa7   : > { %p1504_p4 = pneg %p1503_p9 }
  0xa9   : > { %p1509_p3 = pnand %p1507_p1, %p1504_p4 }
  0xab   : > { %1512 = shalt.err (!%p1509_p3)
}
  0xac   : > { %s1513_s12 = scalar_lea.vmem %s395_s2, 256  ;;  %p1521_p13 = scmp.lt.s32.totalorder %s395_s2, %s395_s2 }
  0xad   : > { %p1514_p10 = scmp.ne.s32.totalorder %s395_s2, %s1513_s12  ;;  %p1522_p0 = scmp.lt.s32.totalorder %s1513_s12, %s1513_s12 }
  0xaf   : > { %p1516_p11 = pnand %p1514_p10, %p1885_p8  ;;  %p1523_p2 = por %p1522_p0, %p1521_p13 }
  0xb1   : > { %p1517_p12 = pneg %p1516_p11 }
  0xb3   : > { %p1524_p5 = pnand %p1523_p2, %p1517_p12 }
  0xb5   : > { %1527 = shalt.err (!%p1524_p5)
}
  0xb6   : > { %s1758_s11 = smov 64   ;;  %s1759_s16 = smov 4  }
  0xb7   : > { %1242 = dma.hbm_to_vmem [thread:$0]  (!%p1869_p6), %s2310_s6, 256, %s395_s2, [#allocation13], %s1758_s11, %s1758_s11, %s1759_s16  }
  0xb8   : > { %s1760_s23 = smov [#allocation17]   ;;  %s1761_s28 = smov [#allocation18]  }
  0xb9   : > { %s423_s26 = sshll.u32 %s1760_s23, 4  ;;  %s437_s24 = sshll.u32 %s1761_s28, 4  ;;  %s424_s26 = int_to_ptr.vmem [resolvable:$true] %s423_s26  ;;  %s2002_s24 = int_to_ptr.vmem [resolvable:$true] %s437_s24 }
  0xba   : > { %s1528_s27 = scalar_lea.hbm %s2287_s8, 1024 }
  0xbb   : > { %p1529_p7 = scmp.ne.s32.totalorder %s2287_s8, %s1528_s27  ;;  %p1535_p1 = scmp.lt.u32.totalorder %s1528_s27, %s2287_s8 }
  0xbd   : > { %p1531_p9 = pnand %p1529_p7, %p1885_p8 }
  0xbf   : > { %p1532_p4 = pneg %p1531_p9 }
  0xc1   : > { %p1537_p3 = pnand %p1535_p1, %p1532_p4 }
  0xc3   : > { %1540 = shalt.err (!%p1537_p3)
}
  0xc4   : > { %s1541_s30 = scalar_lea.vmem %s424_s26, 1024  ;;  %p1549_p13 = scmp.lt.s32.totalorder %s424_s26, %s424_s26 }
  0xc5   : > { %p1542_p10 = scmp.ne.s32.totalorder %s424_s26, %s1541_s30  ;;  %p1550_p0 = scmp.lt.s32.totalorder %s1541_s30, %s1541_s30 }
  0xc7   : > { %p1544_p11 = pnand %p1542_p10, %p1885_p8  ;;  %p1551_p2 = por %p1550_p0, %p1549_p13 }
  0xc9   : > { %p1545_p12 = pneg %p1544_p11 }
  0xcb   : > { %p1552_p5 = pnand %p1551_p2, %p1545_p12 }
  0xcd   : > { %1555 = shalt.err (!%p1552_p5)
}
  0xce   : > { %1248 = dma.hbm_to_vmem [thread:$0]  (!%p1869_p6), %s2287_s8, 1024, %s424_s26, [#allocation16], %s1758_s11, %s1758_s11, %s1759_s16  }
  0xcf   : > { %s1556_s10 = scalar_lea.hbm %s2288_s9, 16 }
  0xd0   : > { %p1557_p7 = scmp.ne.s32.totalorder %s2288_s9, %s1556_s10  ;;  %p1563_p1 = scmp.lt.u32.totalorder %s1556_s10, %s2288_s9 }
  0xd2   : > { %p1559_p9 = pnand %p1557_p7, %p1885_p8 }
  0xd4   : > { %p1560_p4 = pneg %p1559_p9 }
  0xd6   : > { %p1565_p3 = pnand %p1563_p1, %p1560_p4 }
  0xd8   : > { %1568 = shalt.err (!%p1565_p3)
}
  0xd9   : > { %s1569_s11 = scalar_lea.vmem %s2002_s24, 16  ;;  %s1576_s16 = scalar_lea.vmem %s2002_s24, 32 }
  0xda   : > { %p1570_p10 = scmp.ne.s32.totalorder %s2002_s24, %s1569_s11  ;;  %p1577_p13 = scmp.lt.s32.totalorder %s2002_s24, %s2002_s24 }
  0xdb   : > { %p1578_p0 = scmp.lt.s32.totalorder %s1576_s16, %s1569_s11 }
  0xdc   : > { %p1572_p11 = pnand %p1570_p10, %p1885_p8 }
  0xdd   : > { %p1579_p2 = por %p1578_p0, %p1577_p13 }
  0xde   : > { %p1573_p12 = pneg %p1572_p11 }
  0xe0   : > { %p1580_p5 = pnand %p1579_p2, %p1573_p12 }
  0xe2   : > { %1583 = shalt.err (!%p1580_p5)
}
  0xe3   : > { %1251 = dma.hbm_to_vmem [thread:$0]  (!%p1869_p6), %s2288_s9, 16, %s2002_s24, [#allocation19]  }
  0xe4   : > { %s1094_s21 = sadd.s32 4294967294, %s1750_s18   ;;  %s52_s3 = sadd.s32 1, %s1746_s17 }
  0xe5   : > { %p54_p8 = scmp.ge.s32.totalorder %s52_s3, 2  ;;  %s61_s25 = sadd.s32 1, %s1738_s15 }
  0xe6   : > { %p68_p7 = scmp.ne.s32.totalorder %s1738_s15, %s1734_s14  ;;  %p69_p9 = scmp.eq.s32.totalorder %s1750_s18, 0 }
  0xe7   : > { %s2342_s3 = smov (%p54_p8, %s52_s3), 0  ;;  %p74_p1 = scmp.ne.s32.totalorder %s1734_s14, %s1730_s13 }
  0xe8   : > { %p2054_p4 = por %p69_p9, %p68_p7  ;;  %s56_s24 = ssub.s32 %s1746_s17, %s2342_s3 }
  0xe9   : > { %p319_p6 = scmp.eq.s32.totalorder %s1855_s19, 1  ;;  %p59_p3 = scmp.eq.s32.totalorder %s56_s24, 0 }
  0xea   : > { %p2312_p10 = scmp.eq.s32.totalorder %s1855_s19, 0  ;;  %p325_p13 = scmp.eq.s32.totalorder %s1094_s21, 1 }
  0xeb   : > { %p2069_p12 = por %p319_p6, %p68_p7  ;;  %p1271_p2 = scmp.lt.s32.totalorder %s1750_s18, 2 }
  0xec   : > { %p2065_p11 = por %p2312_p10, %p74_p1  ;;  %p2076_p0 = por %p325_p13, %p74_p1 }
  0xed   : > { %s2314_s22 = scalar_select %p2069_p12, 1, 0 }
  0xee   : > { %s2313_s28 = scalar_select %p2065_p11, 1, 0 }
  0xef   : > { %s2074_s10 = scalar_select %p59_p3, %s1738_s15, %s61_s25  }
  0xf0   : > { %s2315_s27 = scalar_select %p2076_p0, 1, 0 }
  0xf1   : > { %s2082_s12 = sand.u32 1, %s1738_s15   ;;  %s1106_s29 = sshll.u32 %s1746_s17, 7 }
  0xf2   : > { %s1105_s2 = sshll.u32 %s2082_s12, 3  ;;  %s2316_s0 = sld [smem:[#allocation30_spill]] }
  0xf3   : > { %s452_s30 = scalar_lea.vmem [#allocation3], %s1105_s2  ;;  %p2093_p5 = pnand %p1271_p2, %p2054_p4 }
  0xf4   : > { %s460_s21 = sshll.u32 %s452_s30, 4  ;;  %s449_s4 = scalar_lea.sflag [#allocation4], %s2082_s12  ;;  %s2097_s21 = int_to_ptr.vmem [resolvable:$true] %s460_s21 }
  0xf5   : > { %p1586_p7 = pneg %p2093_p5 }
  0xf8   : > { %s2089_s26 = scalar_lea.hbm %s2316_s0, %s1106_s29  ;;  %s1589_s2 = scalar_lea.hbm %s2316_s0, 256 }
  0xf9   : > { %s1584_s11 = scalar_lea.hbm %s2089_s26, 128  ;;  %p1590_p4 = scmp.lt.u32.totalorder %s2089_s26, %s2316_s0 }
  0xfa   : > { %p1585_p8 = scmp.ne.s32.totalorder %s2089_s26, %s1584_s11  ;;  %p1591_p6 = scmp.lt.u32.totalorder %s1589_s2, %s1584_s11 }
  0xfb   : > { %p1593_p10 = scmp.lt.u32.totalorder %s1584_s11, %s2089_s26 }
  0xfc   : > { %p1587_p9 = pnand %p1586_p7, %p1585_p8  ;;  %p1592_p3 = por %p1591_p6, %p1590_p4 }
  0xfe   : > { %p1588_p1 = pneg %p1587_p9  ;;  %p1594_p13 = por %p1593_p10, %p1592_p3 }
 0x100   : > { %p1595_p2 = pnand %p1594_p13, %p1588_p1 }
 0x102   : > { %1598 = shalt.err (!%p1595_p2)
}
 0x103   : > { %s1599_s24 = scalar_lea.vmem %s2097_s21, 128  ;;  %s1762_s29 = smov [#allocation3]  }
 0x104   : > { %p1600_p8 = scmp.ne.s32.totalorder %s2097_s21, %s1599_s24  ;;  %s1604_s23 = sshll.u32 %s1762_s29, 4  ;;  %s1605_s23 = int_to_ptr.vmem [resolvable:$false] %s1604_s23 }
 0x105   : > { %s1606_s16 = scalar_lea.vmem %s1605_s23, 256  ;;  %p1607_p12 = scmp.lt.s32.totalorder %s2097_s21, %s1605_s23 }
 0x106   : > { %p1602_p9 = pnand %p1600_p8, %p1586_p7  ;;  %p1608_p4 = scmp.lt.s32.totalorder %s1606_s16, %s1599_s24 }
 0x108   : > { %p1603_p0 = pneg %p1602_p9  ;;  %p1609_p6 = por %p1608_p4, %p1607_p12 }
 0x10a   : > { %p1610_p3 = pnand %p1609_p6, %p1603_p0 }
 0x10c   : > { %1613 = shalt.err (!%p1610_p3)
}
 0x10d   : > { %1255 = dma.hbm_to_vmem [thread:$0]  (!%p2093_p5), %s2089_s26, 128, %s2097_s21, %s449_s4  }
 0x10e   : > { %s1107_s11 = sshll.u32 %s2082_s12, 2  ;;  %s1108_s2 = sshll.u32 %s1746_s17, 6 }
 0x10f   : > { %s2131_s0 = scalar_lea.hbm %s2280_s1, %s1108_s2  ;;  %s471_s24 = scalar_lea.vmem [#allocation6], %s1107_s11 }
 0x110   : > { %s478_s23 = sshll.u32 %s471_s24, 4  ;;  %s2318_s16 = sand.u32 1, %s1750_s18   ;;  %s479_s23 = int_to_ptr.vmem [resolvable:$true] %s478_s23 }
 0x111   : > { %s468_s5 = scalar_lea.sflag [#allocation7], %s2318_s16  ;;  %s1614_s6 = scalar_lea.hbm %s2131_s0, 64 }
 0x112   : > { %p1615_p12 = scmp.ne.s32.totalorder %s2131_s0, %s1614_s6  ;;  %s1619_s26 = scalar_lea.hbm %s2280_s1, 128 }
 0x113   : > { %p1620_p10 = scmp.lt.u32.totalorder %s2131_s0, %s2280_s1  ;;  %p1621_p13 = scmp.lt.u32.totalorder %s1619_s26, %s1614_s6 }
 0x114   : > { %p1617_p0 = pnand %p1615_p12, %p1586_p7  ;;  %p1623_p8 = scmp.lt.u32.totalorder %s1614_s6, %s2131_s0 }
 0x115   : > { %p1622_p2 = por %p1621_p13, %p1620_p10 }
 0x116   : > { %p1618_p1 = pneg %p1617_p0 }
 0x117   : > { %p1624_p9 = por %p1623_p8, %p1622_p2 }
 0x119   : > { %p1625_p4 = pnand %p1624_p9, %p1618_p1 }
 0x11b   : > { %1628 = shalt.err (!%p1625_p4)
}
 0x11c   : > { %s1629_s11 = scalar_lea.vmem %s479_s23, 64  ;;  %s1763_s30 = smov [#allocation6]  }
 0x11d   : > { %p1630_p6 = scmp.ne.s32.totalorder %s479_s23, %s1629_s11  ;;  %s1634_s29 = sshll.u32 %s1763_s30, 4  ;;  %s1635_s29 = int_to_ptr.vmem [resolvable:$false] %s1634_s29 }
 0x11e   : > { %s1636_s24 = scalar_lea.vmem %s1635_s29, 128  ;;  %p1637_p0 = scmp.lt.s32.totalorder %s479_s23, %s1635_s29 }
 0x11f   : > { %p1632_p3 = pnand %p1630_p6, %p1586_p7  ;;  %p1638_p11 = scmp.lt.s32.totalorder %s1636_s24, %s1629_s11 }
 0x121   : > { %p1633_p12 = pneg %p1632_p3  ;;  %p1639_p10 = por %p1638_p11, %p1637_p0 }
 0x123   : > { %p1640_p13 = pnand %p1639_p10, %p1633_p12 }
 0x125   : > { %1643 = shalt.err (!%p1640_p13)
}
 0x126   : > { %1258 = dma.hbm_to_vmem [thread:$0]  (!%p2093_p5), %s2131_s0, 64, %s479_s23, %s468_s5  }
 0x127   : > { %p2319_p1 = scmp.ne.s32.totalorder %s2303_s20, 0 }
 0x128   : > { %s2157_s6 = sand.u32 (!%p2319_p1), 1, %s1734_s14   ;;  %p2320_p11 = scmp.ne.s32.totalorder (!%p2319_p1), %s2313_s28, 0 }
 0x129   : > { %487 = sbr.rel (%p2319_p1) target bundleno = 1360 (0x550), region = 60  ;;  %s1110_s16 = sshll.u32 (!%p2319_p1), %s2157_s6, 3 }
 0x12a   : > { %s490_s4 = scalar_lea.sflag (!%p2319_p1), [#allocation4], %s2157_s6  ;;  %s2163_s12 = scalar_lea.vmem (!%p2319_p1), [#allocation3], %s1110_s16 }
 0x130   : > { %1697 = dma.done.wait (%p2320_p11), %s490_s4, 128  }
 0x131   : > { %1699 = vsyncadd (%p2320_p11), %s490_s4, 4294967168  ;;  %s498_s0 = sand.u32 1, %s1855_s19   ;;  %s1111_s5 = sshll.u32 %s2157_s6, 2 }
 0x132   : > { %s499_s20 = scalar_lea.sflag [#allocation7], %s498_s0  ;;  %s502_s25 = scalar_lea.vmem [#allocation6], %s1111_s5 }
 0x133   : > { %1701 = dma.done.wait (%p2320_p11), %s499_s20, 64  }
 0x134   : > { %1703 = vsyncadd (%p2320_p11), %s499_s20, 4294967232  ;;  %p2321_p5 = scmp.eq.s32.totalorder %s1855_s19, 0 }
 0x136   : > { %1705 = dma.done.wait (%p2321_p5), [#allocation7], 64   ;;  %p2322_p7 = pmov %p2321_p5 }
 0x137   : > { %p2323_p2 = pmov %p2321_p5 }
 0x138   : > { %1707 = vsyncadd (%p2322_p7), [#allocation7], 4294967232 }
 0x139   : > { %1709 = dma.done.wait (%p2323_p2), [#allocation10], 144   ;;  %p2324_p8 = pmov %p2323_p2 }
 0x13a   : > { %p2325_p9 = pmov %p2323_p2 }
 0x13b   : > { %1711 = vsyncadd (%p2324_p8), [#allocation10], 4294967152 }
 0x13c   : > { %1713 = dma.done.wait (%p2325_p9), [#allocation13], 272   ;;  %p2326_p4 = pmov %p2323_p2 }
 0x13d   : > { %p2327_p6 = pmov %p2323_p2 }
 0x13e   : > { %1715 = vsyncadd (%p2326_p4), [#allocation13], 4294967024 }
 0x13f   : > { %1717 = dma.done.wait (%p2327_p6), [#allocation16], 1040   ;;  %p2328_p3 = pmov %p2323_p2 }
 0x140   : > { %p2329_p12 = pmov %p2323_p2 }
 0x141   : > { %1719 = vsyncadd (%p2328_p3), [#allocation16], 4294966256 }
 0x142   : > { %1721 = dma.done.wait (%p2329_p12), [#allocation19], 16   ;;  %p2330_p0 = pmov %p2323_p2 }
 0x143   : > { %v1764_v0 = vmov 0.0   ;;  %vm1765_vm0 = vmmov 0   ;;  %v1766_v1 = vmov 0   ;;  %vm594_vm1 = vcmask 1043456   ;;  %v583_v2 = vld [vmem:[%s502_s25] sm:$0xf] }
 0x144   : > { %1723 = vsyncadd (%p2330_p0), [#allocation19], 4294967280  ;;  %1155 = vmatprep.subr.bf16.mxu1 %v1764_v0  ;;  %1157 = vmatprep.mubr.msk.bf16.mxu1 %vm1765_vm0, %v1764_v0  ;;  %v582_v3 = vld [vmem:[#allocation8] sm:$0xf]  ;;  %v584_v4 = vld [vmem:[#allocation9] sm:$0xff]  ;;  %v596_v5 = vsel %vm594_vm1, %v583_v2, 0 }
 0x145   : > { %1343 = vset.pattern.permute.xlu0 %v1766_v1  ;;  %1169 = vmatprep.subr.bf16.mxu0 %v1764_v0  ;;  %vm590_vm2 = vcmask 64512   ;;  %v638_v8 = vld [vmem:[%s2163_s12] sm:$0xff]  ;;  %v1124_v11 = vld [vmem:[#allocation18] ss:$0 sm:$0xff]  ;;  %vm642_vm3 = vcmask 261120   ;;  %s2208_s19 = scalar_lea.vmem [#allocation20], %s1110_s16 }
 0x146   : > { %1185 = vmatprep.mubr.msk.bf16.mxu0 %vm1765_vm0, %v1764_v0  ;;  %587 = vperm.xlu0 %1343, %v584_v4   ;;  %v1344_v22 = vld [vmem:[#allocation14] sm:$0xff]   ;;  %v1345_v23 = vld [vmem:[#allocation14 + $0x8] sm:$0xff]   ;;  %v1122_v28 = vld [vmem:[#allocation11] ss:$0 sm:$0xff]  ;;  %vm672_vm4 = vcmask 257024   ;;  %s2331_s28 = sld [smem:[#allocation29_spill]] }
 0x147   : > { %1156 = vmatpush3.bf16.msra.mxu1 %v596_v5  ;;  %v1123_v30 = vld [vmem:[#allocation12] ss:$0 sm:$0xff]  ;;  %v1346_v35 = vld [vmem:[#allocation17] sm:$0xff]   ;;  %v1348_v37 = vld [vmem:[#allocation17 + $0x10] sm:$0xff]   ;;  %v1767_v5 = vmov -1.0   ;;  %s901_s26 = sshll.u32 %s2208_s19, 4  ;;  %s2230_s26 = int_to_ptr.vmem [resolvable:$true] %s901_s26 }
 0x148   : > { %1161 = vmatprep.subr.bf16.mxu1 %v1764_v0  ;;  %1170 = vmatpush3.bf16.msra.mxu0 %v1346_v35  ;;  %v1347_v36 = vld [vmem:[#allocation17 + $0x8] sm:$0xff]   ;;  %v1349_v38 = vld [vmem:[#allocation17 + $0x18] sm:$0xff]   ;;  %v1350_v39 = vld [vmem:[#allocation17 + $0x20] sm:$0xff]   ;;  %s2332_s11 = sld [smem:[#allocation36_spill]]  ;;  %s887_s29 = scalar_lea.sflag [#allocation5], %s2157_s6 }
 0x149   : > { %1171 = vmatprep.subr.bf16.mxu0 %v1764_v0  ;;  %v1351_v40 = vld [vmem:[#allocation17 + $0x28] sm:$0xff]   ;;  %v1352_v41 = vld [vmem:[#allocation17 + $0x30] sm:$0xff]   ;;  %v1353_v42 = vld [vmem:[#allocation17 + $0x38] sm:$0xff]   ;;  %s1644_s24 = scalar_lea.vmem %s2230_s26, 128  ;;  %p2333_p13 = scmp.ne.s32.totalorder %s2314_s22, 0 }
 0x14a   : > { %1158 = vmatmul.mubr.msk.bf16.vlgmr.msra.gmra.mrb[0].mxu1 %vm590_vm2, %v582_v3  ;;  %v1125_v43 = vld [vmem:[#allocation15] ss:$0 sm:$0xff]  ;;  %p1645_p10 = scmp.ne.s32.totalorder %s2230_s26, %s1644_s24  ;;  %s1768_s16 = smov [#allocation20]  }
 0x14b   : > { %1165 = vmatprep.mubr.msk.bf16.mxu1 %vm1765_vm0, %v1764_v0  ;;  %1162 = vmatpush3.bf16.msra.mxu1 %v1344_v22  ;;  %s1648_s4 = sshll.u32 %s1768_s16, 4  ;;  %s1649_s4 = int_to_ptr.vmem [resolvable:$false] %s1648_s4 }
 0x14c   : > { %1163 = vmatprep.subr.bf16.mxu1 %v1764_v0  ;;  %1172 = vmatpush3.bf16.msra.mxu0 %v1347_v36  ;;  %s1138_s23 = sshll.u32 %s2331_s28, 7  ;;  %p1646_p1 = pnand %p1645_p10, %p2333_p13 }
 0x14d   : > { %1173 = vmatprep.subr.bf16.mxu0 %v1764_v0  ;;  %s1650_s12 = scalar_lea.vmem %s1649_s4, 256  ;;  %p1651_p5 = scmp.lt.s32.totalorder %s2230_s26, %s1649_s4 }
 0x14e   : > { %s2228_s30 = scalar_lea.hbm %s2332_s11, %s1138_s23  ;;  %p1647_p11 = pneg %p1646_p1 }
 0x14f   : > { %1164 = vmatpush3.bf16.msra.mxu1 %v1345_v23  ;;  %p1652_p7 = scmp.lt.s32.totalorder %s1650_s12, %s1644_s24 }
 0x150   : > { %1174 = vmatpush3.bf16.msra.mxu0 %v1348_v37 }
 0x151   : > { %1175 = vmatprep.subr.bf16.mxu0 %v1764_v0  ;;  %p1653_p2 = por %p1652_p7, %p1651_p5 }
 0x153   : > { %p1654_p8 = pnand %p1653_p2, %p1647_p11 }
 0x154   : > { %1176 = vmatpush3.bf16.msra.mxu0 %v1349_v38 }
 0x155   : > { %1177 = vmatprep.subr.bf16.mxu0 %v1764_v0 }
 0x158   : > { %1178 = vmatpush3.bf16.msra.mxu0 %v1350_v39 }
 0x159   : > { %1179 = vmatprep.subr.bf16.mxu0 %v1764_v0 }
 0x15c   : > { %1180 = vmatpush3.bf16.msra.mxu0 %v1351_v40 }
 0x15d   : > { %1181 = vmatprep.subr.bf16.mxu0 %v1764_v0 }
 0x160   : > { %1182 = vmatpush3.bf16.msra.mxu0 %v1352_v41 }
 0x161   : > { %1183 = vmatprep.subr.bf16.mxu0 %v1764_v0 }
 0x164   : > { %1184 = vmatpush3.bf16.msra.mxu0 %v1353_v42 }
 0x1c5   : > { %v588_v6 = vpop.permute.xlu0 %587 }
 0x21d   : > { %v632_v7 = vpop.f32.mrb[0].mxu1 }
 0x21e   : > { %v633_v9 = vadd.f32 %v632_v7, %v588_v6  ;;  %v1159_v10 = vpop.f32.mrb[1].mxu1 }
 0x21f   : > { %v635_v12 = vpop.f32.mrb[2].mxu1 }
 0x220   : > { %v639_v13 = vadd.f32 %v638_v8, %v633_v9  ;;  %v1160_v14 = vpop.f32.mrb[3].mxu1 }
 0x222   : > { %v681_v15 = vadd.f32 %v1124_v11, %v639_v13  ;;  %v643_v16 = vsel %vm642_vm3, %v639_v13, 0.0 }
 0x223   : > { %644 = vadd.xlane.f32.xlu0 %v643_v16 }
 0x224   : > { %682 = vst.msk [vmem:[%s2208_s19] sm:$0xff] %vm642_vm3, %v681_v15 }
 0x22b   : > { %v778_v12 = vld [vmem:[%s2208_s19] sm:$0xff] }
 0x2b0   : > { %v645_v17 = vpop.xlane.xlu0 %644 }
 0x2b1   : > { %v647_v18 = vmul.f32 0.03125, %v645_v17 }
 0x2b3   : > { %v648_v19 = vsub.f32 %v639_v13, %v647_v18 }
 0x2b5   : > { %v649_v20 = vmul.f32 %v648_v19, %v648_v19 }
 0x2b7   : > { %v650_v21 = vsel %vm642_vm3, %v649_v20, 0.0 }
 0x2b8   : > { %651 = vadd.xlane.f32.xlu1 %v650_v21 }
 0x345   : > { %v652_v24 = vpop.xlane.xlu1 %651 }
 0x346   : > { %v653_v25 = vmul.f32 0.03125, %v652_v24 }
 0x348   : > { %v654_v26 = vadd.f32 1e-05, %v653_v25 }
 0x34a   : > { %1354 = vrsqrt.f32 %v654_v26 }
 0x354   : > { %v1355_v27 = vpop.eup %1354 }
 0x355   : > { %v656_v29 = vmul.f32 %v1355_v27, %v648_v19 }
 0x357   : > { %v663_v31 = vmul.f32 %v1122_v28, %v656_v29 }
 0x359   : > { %v670_v32 = vadd.f32 %v1123_v30, %v663_v31 }
 0x35b   : > { %v671_v33 = vpack.c.bf16 %v670_v32, %v670_v32 }
 0x35d   : > { %673 = vst.msk [vmem:[#allocation2] sm:$0xf] %vm672_vm4, %v671_v33 }
 0x364   : > { %v683_v34 = vld [vmem:[#allocation2] sm:$0xf] }
 0x365   : > { %1166 = vmatmul.mubr.msk.bf16.vlgmr.msra.gmra.mrb[4].mxu1 %vm642_vm3, %v683_v34 }
 0x438   : > { %v745_v44 = vpop.f32.mrb[4].mxu1 }
 0x439   : > { %v746_v45 = vadd.f32 %v1125_v43, %v745_v44  ;;  %v1167_v46 = vpop.f32.mrb[5].mxu1 }
 0x43a   : > { %v748_v47 = vpop.f32.mrb[6].mxu1 }
 0x43b   : > { %v752_v48 = vmul.f32 0.70710677, %v746_v45  ;;  %v1168_v49 = vpop.f32.mrb[7].mxu1  ;;  %v751_v8 = vmul.f32 0.5, %v746_v45 }
 0x43d   : > { %v755_v50 = vand.u32 2147483647, %v752_v48  ;;  %vm753_vm5 = vcmp.ge.f32.partialorder %v752_v48, 0.0 }
 0x43e   : > { %v754_v6 = vsel %vm753_vm5, 1.0, %v1767_v5 }
 0x43f   : > { %v756_v51 = vmul.f32 0.3275911, %v755_v50  ;;  %v769_v53 = vsub.f32 0.0, %v755_v50 }
 0x441   : > { %v757_v52 = vadd.f32 1.0, %v756_v51  ;;  %v770_v55 = vmul.f32 %v769_v53, %v755_v50 }
 0x443   : > { %1356 = vrcp.f32 %v757_v52  ;;  %v771_v58 = vmul.f32 1.442695, %v770_v55 }
 0x445   : > { %1358 = vpow2.f32 %v771_v58 }
 0x44d   : > { %v1357_v54 = vpop.eup %1356 }
 0x44e   : > { %v760_v56 = vmul.f32 1.0614054, %v1357_v54 }
 0x44f   : > { %v1359_v2 = vpop.eup %1358 }
 0x450   : > { %v761_v57 = vadd.f32 -1.4531521, %v760_v56 }
 0x452   : > { %v762_v59 = vmul.f32 %v1357_v54, %v761_v57 }
 0x454   : > { %v763_v60 = vadd.f32 1.4214138, %v762_v59 }
 0x456   : > { %v764_v61 = vmul.f32 %v1357_v54, %v763_v60 }
 0x458   : > { %v765_v62 = vadd.f32 -0.28449672, %v764_v61 }
 0x45a   : > { %v766_v63 = vmul.f32 %v1357_v54, %v765_v62 }
 0x45c   : > { %v767_v0 = vadd.f32 0.2548296, %v766_v63 }
 0x45e   : > { %v768_v1 = vmul.f32 %v1357_v54, %v767_v0 }
 0x460   : > { %v773_v3 = vmul.f32 %v1359_v2, %v768_v1 }
 0x462   : > { %v774_v4 = vsub.f32 1.0, %v773_v3 }
 0x464   : > { %v775_v7 = vmul.f32 %v774_v4, %v754_v6 }
 0x466   : > { %v776_v9 = vadd.f32 1.0, %v775_v7 }
 0x468   : > { %v777_v10 = vmul.f32 %v776_v9, %v751_v8 }
 0x46a   : > { %v779_v11 = vpack.c.bf16 %v777_v10, %v777_v10 }
 0x46c   : > { %1186 = vmatmul.mubr.bf16.vlgmr.msra.gmra.mrb[0].mxu0 %v779_v11 }
 0x53f   : > { %v878_v13 = vpop.f32.mrb[0].mxu0 }
 0x540   : > { %v884_v14 = vadd.f32 %v878_v13, %v778_v12  ;;  %v1187_v15 = vpop.f32.mrb[1].mxu0 }
 0x541   : > { %v881_v16 = vpop.f32.mrb[2].mxu0 }
 0x542   : > { %885 = vst.msk [vmem:[%s2208_s19] sm:$0xff] %vm642_vm3, %v884_v14  ;;  %v1188_v17 = vpop.f32.mrb[3].mxu0 }
 0x543   : > { %1657 = shalt.err (!%p1654_p8)
}
 0x544   : > { %s1658_s6 = scalar_lea.hbm %s2228_s30, 128  ;;  %s1662_s20 = scalar_lea.hbm %s2332_s11, 256 }
 0x545   : > { %p1659_p9 = scmp.ne.s32.totalorder %s2228_s30, %s1658_s6  ;;  %p1663_p3 = scmp.lt.u32.totalorder %s2228_s30, %s2332_s11 }
 0x546   : > { %p1664_p12 = scmp.lt.u32.totalorder %s1662_s20, %s1658_s6  ;;  %p1666_p10 = scmp.lt.u32.totalorder %s1658_s6, %s2228_s30 }
 0x547   : > { %p1660_p4 = pnand %p1659_p9, %p2333_p13 }
 0x548   : > { %p1665_p0 = por %p1664_p12, %p1663_p3 }
 0x549   : > { %p1661_p6 = pneg %p1660_p4 }
 0x54a   : > { %p1667_p1 = por %p1666_p10, %p1665_p0 }
 0x54c   : > { %p1668_p11 = pnand %p1667_p1, %p1661_p6 }
 0x54e   : > { %1671 = shalt.err (!%p1668_p11)
}
 0x54f   : > { %1225 = dma.vmem_to_hbm [thread:$0]  (%p2333_p13), %s2230_s26, 128, %s2228_s30, %s887_s29  }
 0x550 PF: > { %s913_s28 = sand.u32 1, %s1730_s13   ;;  %p2334_p5 = scmp.ne.s32.totalorder %s2315_s27, 0 }
 0x551   : > { %p2335_p7 = scmp.ge.s32.totalorder %s1750_s18, 2  ;;  %s914_s23 = scalar_lea.sflag [#allocation5], %s913_s28 }
 0x553   : > { %p1260_p2 = pnand %p2335_p7, %p2334_p5 }
 0x555   : > { %1725 = dma.done.wait (!%p1260_p2), %s914_s23, 128  }
 0x556   : > { %1727 = vsyncadd (!%p1260_p2), %s914_s23, 4294967168  ;;  %s33_s18 = sadd.s32 1, %s1750_s18   ;;  %s2336_s13 = smov %s1734_s14 }
 0x557   : > { %p30_p8 = scmp.ge.s32.totalorder %s33_s18, 4   ;;  %s2337_s14 = smov %s1738_s15 }
 0x558   : > { %s2338_s15 = smov %s2074_s10  ;;  %s2339_s16 = smov %s1746_s17 }
 0x559   : > { %s2340_s17 = smov %s2342_s3  ;;  %32 = sbr.rel (!%p30_p8) target bundleno = 20 (0x14), region = 159 }
 0x560   :  { %919 = vsyncpa [#allocation4], 1 }
 0x561   :  { %921 = vsyncpa [#allocation4 + $0x1], 1 }
 0x562   :  { %922 = vsyncpa [#allocation7], 1 }
 0x563   :  { %924 = vsyncpa [#allocation7 + $0x1], 1 }
 0x564   :  { %925 = vsyncpa [#allocation10], 1 }
 0x565   :  { %926 = vsyncpa [#allocation13], 1 }
 0x566   :  { %927 = vsyncpa [#allocation16], 1 }
 0x567   :  { %928 = vsyncpa [#allocation19], 1 }
 0x568   :  { %929 = vsyncpa [#allocation5], 1 }
 0x569   :  { %931 = vsyncpa [#allocation5 + $0x1], 1 }

</bundles_post_ra>
